<compile_context>
chip_gen: v6e
topology: v6e:2x2x1
jax: 0.10.0
libtpu: 0.0.40
codegen_flags: <defaults>
</compile_context>

<pallas_src>
import math

import jax
import jax.numpy as jnp
from jax.experimental import pallas as pl
from jax.experimental.pallas import tpu as pltpu

# ----------------------- model hyper-parameters -----------------------------
INPUT_SIZE = 7                 # 3 position + 4 pose
IN_PAD = 8                     # input rows padded to a sublane multiple
HIDDEN_SIZES = [32, 32, 32, 32]
OUTPUT_SIZE = 1
MS_STARTING_LAYER = 2
MS_HIDDEN = 32
GAIN_BIAS_ALPHA = (1.0, 1.0)   # defaults in the module
GAIN_BIAS_RHO = (1.0, 0.5)

BATCH = 16

# Weight-slab row layout (bf16, 64 lanes wide):
#   0:32    w10   (32 x 7)   in cols 0:7
#   32:64   w11   (32 x 32)  in cols 0:32
#   64:128  [ws0; w20] fused (64 x 32)  in cols 0:32
#   128:176 block-diag W2 (48 x 64): ws1 rows 0:2 cols 0:32, w21 rows 8:40 cols 32:64
W_SLAB_ROWS, W_SLAB_COLS = 176, 64
# Bias/constant slab row layout (f32, 1 lane wide):
#   0:32 b10 | 32:64 b11 | 64:128 [bs0; b20] | 128:176 [bs1@0:2, b21@8:40]
#   176:208 w2o column (32) | 208:211 center (3) | 216 b2o | pad to 224
B_SLAB_ROWS = 224


# ----------------------------- Pallas kernel --------------------------------
def mlfc_kernel(inp_ref, w_ref, b_ref, out_ref):
    bf16 = jnp.bfloat16
    x_in = inp_ref[...]                                         # (8, bm) f32

    # Distance to center first: frees the f32 input live range early and the
    # EUP sqrt hides under the first MXU pass.
    center = b_ref[208:211, :]                                  # (3, 1)
    diff = x_in[0:3, :] - center
    n = jnp.sqrt(jnp.sum(diff * diff, axis=0, keepdims=True))   # (1, bm)

    def dot(w, a):
        # bf16 operands, f32 accumulation on the MXU.
        return jnp.dot(w, a.astype(bf16), preferred_element_type=jnp.float32)

    # ---- mlp1 (two Linear + ReLU) ----
    h = jnp.maximum(dot(w_ref[0:32, 0:IN_PAD], x_in) + b_ref[0:32, :], 0.0)
    h = jnp.maximum(dot(w_ref[32:64, 0:32], h) + b_ref[32:64, :], 0.0)

    # ---- fused heads sharing h: [ws0 ; w20] in one (64,32) MXU pass, ReLU ----
    fused = jnp.maximum(dot(w_ref[64:128, 0:32], h) + b_ref[64:128, :], 0.0)  # (64, bm)

    # ---- block-diagonal [ws1 ; w21] in one (48,64) MXU pass ----
    out2 = dot(w_ref[128:176, :], fused) + b_ref[128:176, :]    # (48, bm)
    bd = out2[0:2, :]                                           # mode-switch logits
    y = jnp.maximum(out2[8:40, :], 0.0)                         # mlp2 hidden (32, bm)

    # ---- final (1, bm) layer on the VPU: broadcast-multiply + sublane reduce ----
    w2o_col = b_ref[176:208, :]                                 # (32, 1) f32
    y = jnp.sum(w2o_col * y, axis=0, keepdims=True) + b_ref[216:217, :]  # (1, bm)

    # ---- mode switching combination (all f32; EUP transcendentals) ----
    alpha = GAIN_BIAS_ALPHA[0] * jax.nn.softplus(bd[0:1, :]) + GAIN_BIAS_ALPHA[1]
    rho = GAIN_BIAS_RHO[0] * jax.nn.sigmoid(bd[1:2, :]) + GAIN_BIAS_RHO[1]
    sigma = jax.nn.sigmoid(alpha * (n - rho))
    out_ref[...] = ((1.0 - sigma) * y + sigma * n).astype(out_ref.dtype)


# ------------------------------ packing --------------------------------------
def pack_params(params, center):
    f32, bf16 = jnp.float32, jnp.bfloat16
    wT = lambda w: jnp.asarray(w, f32).T                     # (out, in)
    col = lambda b: jnp.asarray(b, f32).reshape(-1, 1)       # (out, 1)

    w10, w11 = wT(params["w10"]), wT(params["w11"])
    ws0, w20 = wT(params["ws0"]), wT(params["w20"])
    ws1, w21 = wT(params["ws1"]), wT(params["w21"])

    def pad_cols(w):
        return jnp.pad(w, ((0, 0), (0, W_SLAB_COLS - w.shape[1])))

    wf = jnp.concatenate([ws0, w20], axis=0)                 # (64, 32)
    W2 = jnp.zeros((48, W_SLAB_COLS), f32)
    W2 = W2.at[0:2, 0:32].set(ws1)
    W2 = W2.at[8:40, 32:64].set(w21)

    w_slab = jnp.concatenate(
        [pad_cols(w10), pad_cols(w11), pad_cols(wf), W2], axis=0
    ).astype(bf16)                                           # (176, 64) bf16
    assert w_slab.shape == (W_SLAB_ROWS, W_SLAB_COLS)

    b2 = jnp.zeros((48, 1), f32)
    b2 = b2.at[0:2].set(col(params["bs1"])).at[8:40].set(col(params["b21"]))
    center_col = jnp.asarray(center, f32).reshape(3, 1)

    b_slab = jnp.concatenate(
        [
            col(params["b10"]),                               # 0:32
            col(params["b11"]),                               # 32:64
            jnp.concatenate([col(params["bs0"]), col(params["b20"])], 0),  # 64:128
            b2,                                               # 128:176
            jnp.asarray(params["w2o"], f32).reshape(32, 1),   # 176:208 (f32 out weights)
            center_col,                                       # 208:211
            jnp.zeros((5, 1), f32),                           # 211:216 pad
            col(params["b2o"]),                               # 216:217
            jnp.zeros((7, 1), f32),                           # 217:224 pad
        ],
        axis=0,
    )                                                         # (224, 1) f32
    assert b_slab.shape == (B_SLAB_ROWS, 1)
    return w_slab, b_slab


# ------------------------------ tiling ----------------------------------------
def _round_up(x, m):
    return ((x + m - 1) // m) * m


def _pick_block(B):
    """Return (padded_batch, lane_block). Batch is always padded to a multiple
    of the block; >=2 'parallel' steps once B > 128 (v7x dual-TC), block capped
    at 8192 lanes so per-step intermediates stay well inside scoped VMEM."""
    Bp = _round_up(B, 128)
    if Bp <= 128:
        return Bp, Bp                      # tiny batch: launch-overhead bound anyway
    if Bp <= 2 * 8192:
        blk = _round_up((Bp + 1) // 2, 128)   # exactly 2 steps
    else:
        blk = 8192
    Bp = _round_up(Bp, blk)
    return Bp, blk


# ------------------------------ wrapper --------------------------------------
def mlfc_forward(inp, params, center):
    """inp: (B, INPUT_SIZE) f32; params: dict of (in,out) weights / (1,out) biases."""
    B = inp.shape[0]
    w_slab, b_slab = pack_params(params, center)
    Bp, blk = _pick_block(B)

    # (feature, batch) layout, padded to (8, Bp); layout plumbing outside the kernel.
    inp_t = jnp.pad(inp.T.astype(jnp.float32),
                    ((0, IN_PAD - INPUT_SIZE), (0, Bp - B)))

    out_t = pl.pallas_call(
        mlfc_kernel,
        out_shape=jax.ShapeDtypeStruct((1, Bp), jnp.float32),
        grid_spec=pltpu.PrefetchScalarGridSpec(
            num_scalar_prefetch=0,
            grid=(Bp // blk,),
            in_specs=[
                pl.BlockSpec((IN_PAD, blk), lambda i: (0, i)),
                pl.BlockSpec((W_SLAB_ROWS, W_SLAB_COLS), lambda i: (0, 0)),
                pl.BlockSpec((B_SLAB_ROWS, 1), lambda i: (0, 0)),
            ],
            out_specs=pl.BlockSpec((1, blk), lambda i: (0, i)),   # lane-dense output
        ),
        compiler_params=pltpu.CompilerParams(
            dimension_semantics=("parallel",),
        ),
    )(inp_t, w_slab, b_slab)

    return out_t[:, :B].T     # (B, 1), matching the module's output layout


# ------------------------- deterministic params ------------------------------
def xavier_uniform(key, fan_in, fan_out):
    # matches torch.nn.init.xavier_uniform_ (gain=1)
    bound = math.sqrt(6.0 / (fan_in + fan_out))
    return jax.random.uniform(
        key, (fan_in, fan_out), minval=-bound, maxval=bound, dtype=jnp.float32
    )


def make_params(key):
    ks = jax.random.split(key, 7)
    params = {}
    # mlp1: INPUT_SIZE -> 32 -> 32
    params["w10"] = xavier_uniform(ks[0], INPUT_SIZE, HIDDEN_SIZES[0])
    params["b10"] = jnp.zeros((1, HIDDEN_SIZES[0]), jnp.float32)
    params["w11"] = xavier_uniform(ks[1], HIDDEN_SIZES[0], HIDDEN_SIZES[1])
    params["b11"] = jnp.zeros((1, HIDDEN_SIZES[1]), jnp.float32)
    # mlp2: 32 -> 32 -> 32 -> 1
    params["w20"] = xavier_uniform(ks[2], HIDDEN_SIZES[1], HIDDEN_SIZES[2])
    params["b20"] = jnp.zeros((1, HIDDEN_SIZES[2]), jnp.float32)
    params["w21"] = xavier_uniform(ks[3], HIDDEN_SIZES[2], HIDDEN_SIZES[3])
    params["b21"] = jnp.zeros((1, HIDDEN_SIZES[3]), jnp.float32)
    params["w2o"] = xavier_uniform(ks[4], HIDDEN_SIZES[3], OUTPUT_SIZE)
    params["b2o"] = jnp.zeros((1, OUTPUT_SIZE), jnp.float32)
    # mode-switching: 32 -> 32 -> 2
    params["ws0"] = xavier_uniform(ks[5], HIDDEN_SIZES[MS_STARTING_LAYER - 1], MS_HIDDEN)
    params["bs0"] = jnp.zeros((1, MS_HIDDEN), jnp.float32)
    params["ws1"] = xavier_uniform(ks[6], MS_HIDDEN, 2)
    params["bs1"] = jnp.zeros((1, 2), jnp.float32)
    return params


# ------------------------- pure-JAX reference --------------------------------
def mlfc_reference(inp, params, center):
    # Same math as the kernel: bf16 matmul operands with f32 accumulation for
    # the hidden layers; the M=1 output layer and all other arithmetic in f32.
    bf16 = jnp.bfloat16

    def lin(x, w, b):
        return jnp.dot(x.astype(bf16), jnp.asarray(w).astype(bf16),
                       preferred_element_type=jnp.float32) + jnp.asarray(b)

    relu = lambda v: jnp.maximum(v, 0.0)
    h = relu(lin(inp, params["w10"], params["b10"]))
    h = relu(lin(h, params["w11"], params["b11"]))
    s = relu(lin(h, params["ws0"], params["bs0"]))
    bd = lin(s, params["ws1"], params["bs1"])
    y = relu(lin(h, params["w20"], params["b20"]))
    y = relu(lin(y, params["w21"], params["b21"]))
    y = jnp.sum(y * params["w2o"].reshape(1, -1), axis=1, keepdims=True) + params["b2o"]
    alpha = GAIN_BIAS_ALPHA[0] * jax.nn.softplus(bd[:, 0:1]) + GAIN_BIAS_ALPHA[1]
    rho = GAIN_BIAS_RHO[0] * jax.nn.sigmoid(bd[:, 1:2]) + GAIN_BIAS_RHO[1]
    n = jnp.linalg.norm(inp[:, :3] - center.reshape(1, -1), axis=1, keepdims=True)
    sigma = jax.nn.sigmoid(alpha * (n - rho))
    return (1.0 - sigma) * y + sigma * n


# ------------------------------- main ----------------------------------------
if __name__ == "__main__":
    key = jax.random.PRNGKey(0)
    k_inp, k_params, k_center = jax.random.split(key, 3)

    params = make_params(k_params)
    center = jax.random.normal(k_center, (1, 3), dtype=jnp.float32)

    # Exercise both the single-step tiny-batch path and the padded 2-step
    # "parallel" path (B=300 -> padded to 512, two 256-lane steps).
    for b in (BATCH, 300):
        inp = jax.random.normal(jax.random.fold_in(k_inp, b),
                                (b, INPUT_SIZE), dtype=jnp.float32)
        out = jax.block_until_ready(mlfc_forward(inp, params, center))
        ref = mlfc_reference(inp, params, center)
        assert out.shape == (b, OUTPUT_SIZE)
        assert jnp.allclose(out, ref, atol=2e-3, rtol=2e-3), f"mismatch vs reference at B={b}"

    print("KERNEL_OK")
</pallas_src>

<mosaic_0001>
module attributes {stable_mosaic.version = 11 : i64} {
  func.func @mlfc_kernel(%arg0: i32, %arg1: memref<8x128xf32, #tpu.memory_space<vmem>>, %arg2: memref<176x64xbf16, #tpu.memory_space<vmem>>, %arg3: memref<224x1xf32, #tpu.memory_space<vmem>>, %arg4: memref<1x128xf32, #tpu.memory_space<vmem>>) attributes {dimension_semantics = [#tpu.dimension_semantics<parallel>], iteration_bounds = array<i64: 1>, scalar_prefetch = 0 : i64, scratch_operands = 0 : i64, tpu.core_type = #tpu.core_type<tc>, window_params = [{transform_indices = @transform_0, window_bounds = array<i64: 8, 128>}, {pipeline_mode = #tpu.pipeline_mode<synchronous>, transform_indices = @transform_1, window_bounds = array<i64: 176, 64>}, {pipeline_mode = #tpu.pipeline_mode<synchronous>, transform_indices = @transform_2, window_bounds = array<i64: 224, 1>}, {transform_indices = @transform_3, window_bounds = array<i64: 1, 128>}]} {
    %c0 = arith.constant 0 : index
    %c0_0 = arith.constant 0 : index
    %0 = vector.load %arg1[%c0, %c0_0] : memref<8x128xf32, #tpu.memory_space<vmem>>, vector<8x128xf32>
    %c208 = arith.constant 208 : index
    %c0_1 = arith.constant 0 : index
    %1 = vector.load %arg3[%c208, %c0_1] : memref<224x1xf32, #tpu.memory_space<vmem>>, vector<3x1xf32>
    %2 = vector.extract_strided_slice %0 {offsets = [0, 0], sizes = [3, 128], strides = [1, 1]} : vector<8x128xf32> to vector<3x128xf32>
    %3 = vector.broadcast %1 : vector<3x1xf32> to vector<3x128xf32>
    %4 = arith.subf %2, %3 : vector<3x128xf32>
    %5 = arith.mulf %4, %4 : vector<3x128xf32>
    %cst = arith.constant dense<0.000000e+00> : vector<128xf32>
    %6 = vector.multi_reduction <add>, %5, %cst [0] : vector<3x128xf32> to vector<128xf32>
    %7 = vector.shape_cast %6 : vector<128xf32> to vector<1x128xf32>
    %8 = math.sqrt %7 : vector<1x128xf32>
    %c0_2 = arith.constant 0 : index
    %c0_3 = arith.constant 0 : index
    %9 = vector.load %arg2[%c0_2, %c0_3] : memref<176x64xbf16, #tpu.memory_space<vmem>>, vector<32x8xbf16>
    %10 = arith.truncf %0 : vector<8x128xf32> to vector<8x128xbf16>
    %cst_4 = arith.constant dense<0.000000e+00> : vector<32x128xf32>
    %11 = tpu.matmul %9, %10, %cst_4 {dimension_numbers = #tpu.dot_dimension_numbers<[1], [0], [0], [1], [0, 0, 1, 1], [], []>} : vector<32x8xbf16>, vector<8x128xbf16>, vector<32x128xf32> -> vector<32x128xf32>
    %c0_5 = arith.constant 0 : index
    %c0_6 = arith.constant 0 : index
    %12 = vector.load %arg3[%c0_5, %c0_6] : memref<224x1xf32, #tpu.memory_space<vmem>>, vector<32x1xf32>
    %13 = vector.broadcast %12 : vector<32x1xf32> to vector<32x128xf32>
    %14 = arith.addf %11, %13 : vector<32x128xf32>
    %cst_7 = arith.constant 0.000000e+00 : f32
    %15 = vector.broadcast %cst_7 : f32 to vector<32x128xf32>
    %16 = arith.maximumf %14, %15 : vector<32x128xf32>
    %c32 = arith.constant 32 : index
    %c0_8 = arith.constant 0 : index
    %17 = vector.load %arg2[%c32, %c0_8] : memref<176x64xbf16, #tpu.memory_space<vmem>>, vector<32x32xbf16>
    %18 = arith.truncf %16 : vector<32x128xf32> to vector<32x128xbf16>
    %cst_9 = arith.constant dense<0.000000e+00> : vector<32x128xf32>
    %19 = tpu.matmul %17, %18, %cst_9 {dimension_numbers = #tpu.dot_dimension_numbers<[1], [0], [0], [1], [0, 0, 1, 1], [], []>} : vector<32x32xbf16>, vector<32x128xbf16>, vector<32x128xf32> -> vector<32x128xf32>
    %c32_10 = arith.constant 32 : index
    %c0_11 = arith.constant 0 : index
    %20 = vector.load %arg3[%c32_10, %c0_11] : memref<224x1xf32, #tpu.memory_space<vmem>>, vector<32x1xf32>
    %21 = vector.broadcast %20 : vector<32x1xf32> to vector<32x128xf32>
    %22 = arith.addf %19, %21 : vector<32x128xf32>
    %cst_12 = arith.constant 0.000000e+00 : f32
    %23 = vector.broadcast %cst_12 : f32 to vector<32x128xf32>
    %24 = arith.maximumf %22, %23 : vector<32x128xf32>
    %c64 = arith.constant 64 : index
    %c0_13 = arith.constant 0 : index
    %25 = vector.load %arg2[%c64, %c0_13] : memref<176x64xbf16, #tpu.memory_space<vmem>>, vector<64x32xbf16>
    %26 = arith.truncf %24 : vector<32x128xf32> to vector<32x128xbf16>
    %cst_14 = arith.constant dense<0.000000e+00> : vector<64x128xf32>
    %27 = tpu.matmul %25, %26, %cst_14 {dimension_numbers = #tpu.dot_dimension_numbers<[1], [0], [0], [1], [0, 0, 1, 1], [], []>} : vector<64x32xbf16>, vector<32x128xbf16>, vector<64x128xf32> -> vector<64x128xf32>
    %c64_15 = arith.constant 64 : index
    %c0_16 = arith.constant 0 : index
    %28 = vector.load %arg3[%c64_15, %c0_16] : memref<224x1xf32, #tpu.memory_space<vmem>>, vector<64x1xf32>
    %29 = vector.broadcast %28 : vector<64x1xf32> to vector<64x128xf32>
    %30 = arith.addf %27, %29 : vector<64x128xf32>
    %cst_17 = arith.constant 0.000000e+00 : f32
    %31 = vector.broadcast %cst_17 : f32 to vector<64x128xf32>
    %32 = arith.maximumf %30, %31 : vector<64x128xf32>
    %c128 = arith.constant 128 : index
    %c0_18 = arith.constant 0 : index
    %33 = vector.load %arg2[%c128, %c0_18] : memref<176x64xbf16, #tpu.memory_space<vmem>>, vector<48x64xbf16>
    %34 = arith.truncf %32 : vector<64x128xf32> to vector<64x128xbf16>
    %cst_19 = arith.constant dense<0.000000e+00> : vector<48x128xf32>
    %35 = tpu.matmul %33, %34, %cst_19 {dimension_numbers = #tpu.dot_dimension_numbers<[1], [0], [0], [1], [0, 0, 1, 1], [], []>} : vector<48x64xbf16>, vector<64x128xbf16>, vector<48x128xf32> -> vector<48x128xf32>
    %c128_20 = arith.constant 128 : index
    %c0_21 = arith.constant 0 : index
    %36 = vector.load %arg3[%c128_20, %c0_21] : memref<224x1xf32, #tpu.memory_space<vmem>>, vector<48x1xf32>
    %37 = vector.broadcast %36 : vector<48x1xf32> to vector<48x128xf32>
    %38 = arith.addf %35, %37 : vector<48x128xf32>
    %39 = vector.extract_strided_slice %38 {offsets = [0, 0], sizes = [2, 128], strides = [1, 1]} : vector<48x128xf32> to vector<2x128xf32>
    %40 = vector.extract_strided_slice %38 {offsets = [8, 0], sizes = [32, 128], strides = [1, 1]} : vector<48x128xf32> to vector<32x128xf32>
    %cst_22 = arith.constant 0.000000e+00 : f32
    %41 = vector.broadcast %cst_22 : f32 to vector<32x128xf32>
    %42 = arith.maximumf %40, %41 : vector<32x128xf32>
    %c176 = arith.constant 176 : index
    %c0_23 = arith.constant 0 : index
    %43 = vector.load %arg3[%c176, %c0_23] : memref<224x1xf32, #tpu.memory_space<vmem>>, vector<32x1xf32>
    %44 = vector.broadcast %43 : vector<32x1xf32> to vector<32x128xf32>
    %45 = arith.mulf %44, %42 : vector<32x128xf32>
    %cst_24 = arith.constant dense<0.000000e+00> : vector<128xf32>
    %46 = vector.multi_reduction <add>, %45, %cst_24 [0] : vector<32x128xf32> to vector<128xf32>
    %47 = vector.shape_cast %46 : vector<128xf32> to vector<1x128xf32>
    %c216 = arith.constant 216 : index
    %c0_25 = arith.constant 0 : index
    %48 = vector.load %arg3[%c216, %c0_25] : memref<224x1xf32, #tpu.memory_space<vmem>>, vector<1x1xf32>
    %49 = vector.broadcast %48 : vector<1x1xf32> to vector<1x128xf32>
    %50 = arith.addf %47, %49 : vector<1x128xf32>
    %51 = vector.extract_strided_slice %39 {offsets = [0, 0], sizes = [1, 128], strides = [1, 1]} : vector<2x128xf32> to vector<1x128xf32>
    %cst_26 = arith.constant 0.000000e+00 : f32
    %52 = vector.broadcast %cst_26 : f32 to vector<1x128xf32>
    %53 = arith.maximumf %51, %52 : vector<1x128xf32>
    %54 = vector.broadcast %cst_26 : f32 to vector<1x128xf32>
    %55 = arith.subf %51, %54 : vector<1x128xf32>
    %56 = arith.cmpf one, %55, %55 : vector<1x128xf32>
    %57 = vector.broadcast %cst_26 : f32 to vector<1x128xf32>
    %58 = arith.addf %51, %57 : vector<1x128xf32>
    %59 = math.absf %55 : vector<1x128xf32>
    %cst_27 = arith.constant 0.000000e+00 : f32
    %60 = vector.broadcast %cst_27 : f32 to vector<1x128xf32>
    %61 = arith.subf %60, %59 : vector<1x128xf32>
    %62 = math.exp %61 : vector<1x128xf32>
    %63 = math.log1p %62 : vector<1x128xf32>
    %64 = arith.addf %53, %63 : vector<1x128xf32>
    %65 = arith.select %56, %58, %64 : vector<1x128xi1>, vector<1x128xf32>
    %cst_28 = arith.constant 1.000000e+00 : f32
    %66 = vector.broadcast %cst_28 : f32 to vector<1x128xf32>
    %67 = arith.mulf %66, %65 : vector<1x128xf32>
    %cst_29 = arith.constant 1.000000e+00 : f32
    %68 = vector.broadcast %cst_29 : f32 to vector<1x128xf32>
    %69 = arith.addf %67, %68 : vector<1x128xf32>
    %70 = vector.extract_strided_slice %39 {offsets = [1, 0], sizes = [1, 128], strides = [1, 1]} : vector<2x128xf32> to vector<1x128xf32>
    %71 = arith.negf %70 : vector<1x128xf32>
    %72 = math.exp %71 : vector<1x128xf32>
    %cst_30 = arith.constant 1.000000e+00 : f32
    %73 = vector.broadcast %cst_30 : f32 to vector<1x128xf32>
    %74 = arith.addf %73, %72 : vector<1x128xf32>
    %75 = arith.divf %73, %74 : vector<1x128xf32>
    %cst_31 = arith.constant 1.000000e+00 : f32
    %76 = vector.broadcast %cst_31 : f32 to vector<1x128xf32>
    %77 = arith.mulf %76, %75 : vector<1x128xf32>
    %cst_32 = arith.constant 5.000000e-01 : f32
    %78 = vector.broadcast %cst_32 : f32 to vector<1x128xf32>
    %79 = arith.addf %77, %78 : vector<1x128xf32>
    %80 = arith.subf %8, %79 : vector<1x128xf32>
    %81 = arith.mulf %69, %80 : vector<1x128xf32>
    %82 = arith.negf %81 : vector<1x128xf32>
    %83 = math.exp %82 : vector<1x128xf32>
    %cst_33 = arith.constant 1.000000e+00 : f32
    %84 = vector.broadcast %cst_33 : f32 to vector<1x128xf32>
    %85 = arith.addf %84, %83 : vector<1x128xf32>
    %86 = arith.divf %84, %85 : vector<1x128xf32>
    %cst_34 = arith.constant 1.000000e+00 : f32
    %87 = vector.broadcast %cst_34 : f32 to vector<1x128xf32>
    %88 = arith.subf %87, %86 : vector<1x128xf32>
    %89 = arith.mulf %88, %50 : vector<1x128xf32>
    %90 = arith.mulf %86, %8 : vector<1x128xf32>
    %91 = arith.addf %89, %90 : vector<1x128xf32>
    %c0_35 = arith.constant 0 : index
    %c0_36 = arith.constant 0 : index
    %92 = vector.load %arg4[%c0_35, %c0_36] : memref<1x128xf32, #tpu.memory_space<vmem>>, vector<1x128xf32>
    tpu.vector_store %arg4[%c0_35, %c0_36], %91 {strides = array<i32>} : memref<1x128xf32, #tpu.memory_space<vmem>>, vector<1x128xf32>,
    return
  }
  func.func @transform_0(%arg0: i32) -> (i32, i32) {
    %c0_i32 = arith.constant 0 : i32
    %c0_i32_0 = arith.constant 0 : i32
    return %c0_i32, %arg0 : i32, i32
  }
  func.func @transform_1(%arg0: i32) -> (i32, i32) {
    %c0_i32 = arith.constant 0 : i32
    %c0_i32_0 = arith.constant 0 : i32
    %c0_i32_1 = arith.constant 0 : i32
    return %c0_i32, %c0_i32_0 : i32, i32
  }
  func.func @transform_2(%arg0: i32) -> (i32, i32) {
    %c0_i32 = arith.constant 0 : i32
    %c0_i32_0 = arith.constant 0 : i32
    %c0_i32_1 = arith.constant 0 : i32
    return %c0_i32, %c0_i32_0 : i32, i32
  }
  func.func @transform_3(%arg0: i32) -> (i32, i32) {
    %c0_i32 = arith.constant 0 : i32
    %c0_i32_0 = arith.constant 0 : i32
    return %c0_i32, %arg0 : i32, i32
  }
}

</mosaic_0001>

<bundles_post_ra>
// kernel: tpu_custom_call.1
= control target key start
LH: loop header
LB: loop body
LE: loop exit
PB: predicated region body
PF: predicated region fallthrough
CT: control target
= control target key end

     0   :  { %vm86_vm0 = vcmask 1043456   ;;  %vm79_vm1 = vcmask 64512   ;;  %v780_v7 = vmov 0   ;;  %s946_s0 = inlined_call_operand.vmem [shape: f32[8,128], index: 0, kind: input, shape index: {}]   ;;  %s947_s1 = inlined_call_operand.vmem [shape: bf16[176,64], index: 1, kind: input, shape index: {}]   ;;  %s948_s2 = inlined_call_operand.vmem [shape: f32[224,1], index: 2, kind: input, shape index: {}]   ;;  %s949_s3 = inlined_call_operand.hbm [shape: f32[1,128], index: 3, kind: output, shape index: {}]  }
   0x1   :  { %v807_v0 = vld [vmem:[%s946_s0] sm:$0xff]  ;;  %v47_v3 = vld [vmem:[%s948_s2 + $0x10] sm:$0xff]  ;;  %v734_v5 = vld [vmem:[%s947_s1 + $0x8] sm:$0xff]   ;;  %731 = vset.pattern.permute.xlu0 %v780_v7  ;;  %732 = vset.pattern.permute.xlu1 %v780_v7 }
   0x2   :  { %v44_v1 = vpack.c.bf16 %v807_v0, %v807_v0  ;;  %v733_v2 = vld [vmem:[%s947_s1] sm:$0xff]   ;;  %61 = vperm.xlu0 %731, %v47_v3   ;;  %v48_v8 = vld [vmem:[%s948_s2 + $0x18] sm:$0xff]  ;;  %v46_v9 = vld [vmem:[%s948_s2 + $0x8] sm:$0xff] }
   0x3   :  { %682 = vmatprep.mubr.msk.bf16.mxu0 %vm79_vm1, %v733_v2  ;;  %v45_v6 = vld [vmem:[%s948_s2] sm:$0xff]  ;;  %v151_v10 = vld [vmem:[%s948_s2 + $0x30] sm:$0xff]  ;;  %v152_v11 = vld [vmem:[%s948_s2 + $0x38] sm:$0xff] }
   0x4   :  { %726 = vmatprep.subr.msk.bf16.mxu0 %vm86_vm0, %v44_v1  ;;  %v88_v4 = vsel %vm86_vm0, %v44_v1, 0  ;;  %51 = vperm.xlu1 %732, %v45_v6   ;;  %v149_v12 = vld [vmem:[%s948_s2 + $0x20] sm:$0xff]  ;;  %v150_v13 = vld [vmem:[%s948_s2 + $0x28] sm:$0xff] }
   0x5   :  { %681 = vmatpush3.bf16.msra.mxu0 %v88_v4 }
   0x6   :  { %66 = vperm.xlu0 %731, %v48_v8  }
   0x8   :  { %683 = vmatmul.mubr.msk.bf16.vlgmr.msra.gmra.mxu0 %vm79_vm1, %v734_v5  ;;  %56 = vperm.xlu1 %732, %v46_v9  }
   0xa   :  { %165 = vperm.xlu0 %731, %v151_v10  }
   0xc   :  { %170 = vperm.xlu1 %732, %v152_v11  }
   0xe   :  { %155 = vperm.xlu0 %731, %v149_v12  }
   0xf   :  { %8 = vsyncpa [#allocation3], 0  ;;  %v259_v14 = vld [vmem:[%s948_s2 + $0x70] sm:$0xff]  ;;  %v260_v15 = vld [vmem:[%s948_s2 + $0x78] sm:$0xff]  ;;  %vm183_vm2 = vcmask 261120   ;;  %v781_v12 = vmov 0.0  }
  0x10   :  { %160 = vperm.xlu1 %732, %v150_v13   ;;  %v257_v16 = vld [vmem:[%s948_s2 + $0x60] sm:$0xff]  ;;  %v258_v17 = vld [vmem:[%s948_s2 + $0x68] sm:$0xff]  ;;  %v255_v18 = vld [vmem:[%s948_s2 + $0x50] sm:$0xff]  ;;  %706 = vmatprep.subr.bf16.mxu1 %v781_v12  ;;  %vm782_vm3 = vmmov 0   ;;  %vm466_vm4 = vcmask 523264   ;;  %vm25_vm5 = vcmask 1042432  }
  0x11   :  { %v256_v19 = vld [vmem:[%s948_s2 + $0x58] sm:$0xff]  ;;  %v253_v20 = vld [vmem:[%s948_s2 + $0x40] sm:$0xff]  ;;  %v254_v21 = vld [vmem:[%s948_s2 + $0x48] sm:$0xff]  ;;  %714 = vmatprep.mubr.msk.bf16.mxu1 %vm782_vm3, %v781_v12 }
  0x12   :  { %293 = vperm.xlu0 %731, %v259_v14   ;;  %v416_v22 = vld [vmem:[%s948_s2 + $0x80] sm:$0xff]  ;;  %v17_v23 = vld [vmem:[%s948_s2 + $0xd0] sm:$0x7]  ;;  %v417_v24 = vld [vmem:[%s948_s2 + $0x88] sm:$0xff] }
  0x13   :  { %v418_v25 = vld [vmem:[%s948_s2 + $0x90] sm:$0xff]  ;;  %v419_v26 = vld [vmem:[%s948_s2 + $0x98] sm:$0xff]  ;;  %v420_v27 = vld [vmem:[%s948_s2 + $0xa0] sm:$0xff] }
  0x14   :  { %298 = vperm.xlu1 %732, %v260_v15   ;;  %v536_v28 = vld [vmem:[%s948_s2 + $0xb0] sm:$0xff]  ;;  %v537_v29 = vld [vmem:[%s948_s2 + $0xb8] sm:$0xff]  ;;  %v538_v30 = vld [vmem:[%s948_s2 + $0xc0] sm:$0xff] }
  0x15   :  { %v539_v31 = vld [vmem:[%s948_s2 + $0xc8] sm:$0xff]  ;;  %v573_v32 = vld [vmem:[%s948_s2 + $0xd8] sm:$0x1]  ;;  %v735_v33 = vld [vmem:[%s947_s1 + $0x10] sm:$0xff]  }
  0x16   :  { %283 = vperm.xlu0 %731, %v257_v16   ;;  %690 = vmatprep.mubr.msk.bf16.mxu0 %vm183_vm2, %v735_v33  ;;  %v736_v52 = vld [vmem:[%s947_s1 + $0x18] sm:$0xff]   ;;  %v737_v53 = vld [vmem:[%s947_s1 + $0x20] sm:$0xff]   ;;  %v738_v9 = vld [vmem:[%s947_s1 + $0x28] sm:$0xff]  }
  0x17   :  { %v739_v10 = vld [vmem:[%s947_s1 + $0x30] sm:$0xff]   ;;  %v740_v11 = vld [vmem:[%s947_s1 + $0x38] sm:$0xff]  }
  0x18   :  { %288 = vperm.xlu1 %732, %v258_v17  }
  0x1a   :  { %273 = vperm.xlu0 %731, %v255_v18  }
  0x1c   :  { %278 = vperm.xlu1 %732, %v256_v19  }
  0x1e   :  { %263 = vperm.xlu0 %731, %v253_v20  }
  0x20   :  { %268 = vperm.xlu1 %732, %v254_v21  }
  0x22   :  { %424 = vperm.xlu0 %731, %v416_v22  }
  0x24   :  { %20 = vperm.xlu1 %732, %v17_v23  }
  0x26   :  { %429 = vperm.xlu0 %731, %v417_v24  }
  0x28   :  { %434 = vperm.xlu1 %732, %v418_v25  }
  0x2a   :  { %439 = vperm.xlu0 %731, %v419_v26  }
  0x2c   :  { %444 = vperm.xlu1 %732, %v420_v27  }
  0x2e   :  { %542 = vperm.xlu0 %731, %v536_v28  }
  0x30   :  { %547 = vperm.xlu1 %732, %v537_v29  }
  0x32   :  { %552 = vperm.xlu0 %731, %v538_v30  }
  0x34   :  { %557 = vperm.xlu1 %732, %v539_v31  }
  0x36   :  { %576 = vperm.xlu0 %731, %v573_v32  }
  0x7d   :  { %v62_v34 = vpop.permute.xlu0 %61 }
  0x7f   :  { %v52_v35 = vpop.permute.xlu1 %51 }
  0x81   :  { %v67_v39 = vpop.permute.xlu0 %66 }
  0x83   :  { %v57_v43 = vpop.permute.xlu1 %56 }
  0x85   :  { %v166_v54 = vpop.permute.xlu0 %165 }
  0x87   :  { %v171_v55 = vpop.permute.xlu1 %170 }
  0x89   :  { %v156_v59 = vpop.permute.xlu0 %155 }
  0x8b   :  { %v161_v63 = vpop.permute.xlu1 %160 }
  0x8d   :  { %v294_v16 = vpop.permute.xlu0 %293 }
  0x8f   :  { %v299_v14 = vpop.permute.xlu1 %298 }
  0x91   :  { %v284_v21 = vpop.permute.xlu0 %283 }
  0x93   :  { %v289_v19 = vpop.permute.xlu1 %288 }
  0x95   :  { %v274_v32 = vpop.permute.xlu0 %273 }
  0x97   :  { %v279_v26 = vpop.permute.xlu1 %278 }
  0xc8   :  { %v684_v36 = vpop.f32.mrf.mxu0 }
  0xc9   :  { %v133_v38 = vadd.f32 %v684_v36, %v62_v34 }
  0xca   :  { %v124_v37 = vpop.f32.mrf.mxu0 }
  0xcb   :  { %v125_v41 = vadd.f32 %v124_v37, %v52_v35  ;;  %v141_v45 = vmax.f32 %v133_v38, 0.0  ;;  %v269_v38 = vpop.permute.xlu1 %268 }
  0xcc   :  { %v685_v40 = vpop.f32.mrf.mxu0 }
  0xcd   :  { %v136_v42 = vadd.f32 %v685_v40, %v67_v39  ;;  %v139_v48 = vmax.f32 %v125_v41, 0.0 }
  0xce   :  { %v127_v44 = vpop.f32.mrf.mxu0 }
  0xcf   :  { %v142_v46 = vmax.f32 %v136_v42, 0.0  ;;  %v128_v47 = vadd.f32 %v127_v44, %v57_v43  ;;  %v264_v42 = vpop.permute.xlu0 %263 }
  0xd1   :  { %v148_v49 = vpack.c.bf16 %v142_v46, %v141_v45  ;;  %v140_v50 = vmax.f32 %v128_v47, 0.0 }
  0xd3   :  { %v147_v51 = vpack.c.bf16 %v140_v50, %v139_v48  ;;  %686 = vmatprep.subr.bf16.mxu0 %v148_v49  ;;  %v742_v50 = vld [vmem:[%s947_s1 + $0x48] sm:$0xff]  }
  0xd4   :  { %687 = vmatpush3.bf16.msra.mxu0 %v148_v49  ;;  %v741_v49 = vld [vmem:[%s947_s1 + $0x40] sm:$0xff]  }
  0xd5   :  { %688 = vmatprep.subr.bf16.mxu0 %v147_v51 }
  0xd8   :  { %689 = vmatpush3.bf16.msra.mxu0 %v147_v51  ;;  %v743_v51 = vld [vmem:[%s947_s1 + $0x50] sm:$0xff]   ;;  %s783_s1 = smov [#allocation2]  }
  0xd9   :  { %s628_s5 = sshll.u32 %s783_s1, 4  ;;  %s629_s5 = int_to_ptr.vmem [resolvable:$true] %s628_s5 }
  0xda   :  { %s758_s6 = scalar_lea.vmem %s629_s5, 16  ;;  %s762_s7 = scalar_lea.vmem %s629_s5, 32 }
  0xdb   :  { %691 = vmatmul.mubr.msk.bf16.vlgmr.msra.gmra.mxu0 %vm183_vm2, %v736_v52  ;;  %v21_v52 = vpop.permute.xlu1 %20  ;;  %p759_p0 = scmp.ne.s32.totalorder %s629_s5, %s758_s6  ;;  %p763_p1 = scmp.lt.s32.totalorder %s629_s5, %s629_s5 }
  0xdc   :  { %698 = vmatprep.mubr.msk.bf16.mxu0 %vm183_vm2, %v737_v53  ;;  %v23_v53 = vsub.f32 %v807_v0, %v21_v52  ;;  %p764_p2 = scmp.lt.s32.totalorder %s762_s7, %s758_s6 }
  0xde   :  { %p765_p3 = por %p764_p2, %p763_p1 }
  0xe0   :  { %p766_p4 = pnand %p765_p3, %p759_p0 }
 0x19b   :  { %v692_v56 = vpop.f32.mrf.mxu0 }
 0x19c   :  { %v233_v58 = vadd.f32 %v692_v56, %v166_v54  ;;  %v24_v54 = vmul.f32 %v23_v53, %v23_v53 }
 0x19d   :  { %v224_v57 = vpop.f32.mrf.mxu0 }
 0x19e   :  { %v225_v61 = vadd.f32 %v224_v57, %v156_v59  ;;  %v241_v2 = vmax.f32 %v233_v58, 0.0  ;;  %v425_v58 = vpop.permute.xlu0 %424 }
 0x19f   :  { %v693_v60 = vpop.f32.mrf.mxu0 }
 0x1a0   :  { %v236_v62 = vadd.f32 %v693_v60, %v171_v55  ;;  %v239_v5 = vmax.f32 %v225_v61, 0.0  ;;  %v26_v55 = vsel %vm25_vm5, %v24_v54, 0.0 }
 0x1a1   :  { %v227_v1 = vpop.f32.mrf.mxu0  ;;  %v27_v56 = vrot.slane %v26_v55, 4 }
 0x1a2   :  { %v242_v3 = vmax.f32 %v236_v62, 0.0  ;;  %v228_v4 = vadd.f32 %v227_v1, %v161_v63 }
 0x1a3   :  { %v28_v57 = vadd.f32 %v27_v56, %v26_v55 }
 0x1a4   :  { %v252_v6 = vpack.c.bf16 %v242_v3, %v241_v2  ;;  %v240_v7 = vmax.f32 %v228_v4, 0.0 }
 0x1a5   :  { %v29_v60 = vrot.slane %v28_v57, 2 }
 0x1a6   :  { %v251_v8 = vpack.c.bf16 %v240_v7, %v239_v5  ;;  %694 = vmatprep.subr.bf16.mxu0 %v252_v6 }
 0x1a7   :  { %695 = vmatpush3.bf16.msra.mxu0 %v252_v6  ;;  %v30_v3 = vadd.f32 %v29_v60, %v28_v57 }
 0x1a8   :  { %696 = vmatprep.subr.bf16.mxu0 %v251_v8 }
 0x1a9   :  { %v31_v7 = vrot.slane %v30_v3, 1 }
 0x1ab   :  { %697 = vmatpush3.bf16.msra.mxu0 %v251_v8 }
 0x1ae   :  { %699 = vmatmul.mubr.msk.bf16.vlgmr.msra.gmra.mxu0 %vm183_vm2, %v738_v9 }
 0x1af   :  { %702 = vmatprep.mubr.msk.bf16.mxu0 %vm183_vm2, %v739_v10  ;;  %v32_v10 = vadd.f32 %v31_v7, %v30_v3 }
 0x1b1   :  { %vm35_vm6 = vcmp.eq.f32.partialorder %v32_v10, inf  ;;  %vm37_vm7 = vcmp.eq.f32.partialorder %v32_v10, 0.0 }
 0x1b6   :  { %703 = vmatmul.mubr.msk.bf16.gmra.mxu0 %vm183_vm2, %v740_v11 }
 0x26e   :  { %v700_v13 = vpop.f32.mrf.mxu0 }
 0x26f   :  { %v376_v36 = vadd.f32 %v700_v13, %v274_v32 }
 0x270   :  { %v367_v15 = vpop.f32.mrf.mxu0 }
 0x271   :  { %v400_v43 = vmax.f32 %v376_v36, 0.0  ;;  %v368_v44 = vadd.f32 %v367_v15, %v264_v42 }
 0x272   :  { %v701_v17 = vpop.f32.mrf.mxu0 }
 0x273   :  { %v379_v33 = vadd.f32 %v701_v17, %v279_v26  ;;  %v398_v47 = vmax.f32 %v368_v44, 0.0 }
 0x274   :  { %v370_v18 = vpop.f32.mrf.mxu0 }
 0x275   :  { %v401_v39 = vmax.f32 %v379_v33, 0.0  ;;  %v371_v40 = vadd.f32 %v370_v18, %v269_v38 }
 0x276   :  { %v704_v20 = vpop.f32.mrf.mxu0 }
 0x277   :  { %v392_v23 = vadd.f32 %v704_v20, %v294_v16  ;;  %v413_v45 = vpack.c.bf16 %v401_v39, %v400_v43  ;;  %v399_v46 = vmax.f32 %v371_v40, 0.0  ;;  %v430_v20 = vpop.permute.xlu0 %429 }
 0x278   :  { %v383_v22 = vpop.f32.mrf.mxu0 }
 0x279   :  { %v404_v28 = vmax.f32 %v392_v23, 0.0  ;;  %v384_v29 = vadd.f32 %v383_v22, %v284_v21  ;;  %v412_v48 = vpack.c.bf16 %v399_v46, %v398_v47  ;;  %v435_v22 = vpop.permute.xlu1 %434 }
 0x27a   :  { %v705_v24 = vpop.f32.mrf.mxu0 }
 0x27b   :  { %v395_v25 = vadd.f32 %v705_v24, %v299_v14  ;;  %v402_v37 = vmax.f32 %v384_v29, 0.0  ;;  %v440_v26 = vpop.permute.xlu0 %439 }
 0x27c   :  { %v386_v27 = vpop.f32.mrf.mxu0 }
 0x27d   :  { %v405_v30 = vmax.f32 %v395_v25, 0.0  ;;  %v387_v31 = vadd.f32 %v386_v27, %v289_v19 }
 0x27f   :  { %v403_v34 = vmax.f32 %v387_v31, 0.0  ;;  %v415_v35 = vpack.c.bf16 %v405_v30, %v404_v28  ;;  %v445_v28 = vpop.permute.xlu1 %444  ;;  %v38_v30 = vand.u32 2147483648, %v32_v10  ;;  %v543_v39 = vpop.permute.xlu0 %542 }
 0x281   :  { %707 = vmatpush3.bf16.msra.mxu1 %v415_v35  ;;  %v414_v41 = vpack.c.bf16 %v403_v34, %v402_v37 }
 0x282   :  { %708 = vmatprep.subr.bf16.mxu1 %v781_v12 }
 0x283   :  { %v548_v46 = vpop.permute.xlu1 %547  ;;  %v553_v55 = vpop.permute.xlu0 %552 }
 0x285   :  { %709 = vmatpush3.bf16.msra.mxu1 %v414_v41 }
 0x286   :  { %710 = vmatprep.subr.bf16.mxu1 %v781_v12 }
 0x289   :  { %711 = vmatpush3.bf16.msra.mxu1 %v413_v45 }
 0x28a   :  { %712 = vmatprep.subr.bf16.mxu1 %v781_v12 }
 0x28d   :  { %713 = vmatpush3.bf16.msra.mxu1 %v412_v48 }
 0x290   :  { %715 = vmatmul.mubr.msk.bf16.vlgmr.msra.gmra.mxu1 %vm466_vm4, %v741_v49 }
 0x291   :  { %718 = vmatprep.mubr.msk.bf16.mxu1 %vm782_vm3, %v781_v12 }
 0x298   :  { %719 = vmatmul.mubr.msk.bf16.gmra.mxu1 %vm466_vm4, %v742_v50 }
 0x299   :  { %722 = vmatprep.mubr.msk.bf16.mxu1 %vm782_vm3, %v781_v12 }
 0x2a0   :  { %723 = vmatmul.mubr.msk.bf16.gmra.mxu1 %vm466_vm4, %v743_v51 }
 0x350   :  { %v510_v59 = vpop.f32.mrf.mxu1 }
 0x351   :  { %v935_v61 = vadd.f32 %v510_v59, %v425_v58  ;;  %v558_v59 = vpop.permute.xlu1 %557 }
 0x352   :  { %v716_v62 = vpop.f32.mrf.mxu1 }
 0x353   :  { %v583_v63 = vand.u32 2147483647, %v935_v61  ;;  %v658_v1 = vmul.f32 -1.442695, %v935_v61  ;;  %v580_v40 = vmax.f32 %v935_v61, 0.0  ;;  %vm581_vm9 = vcmp.ne.f32.partialorder %v935_v61, %v935_v61 }
 0x354   :  { %v513_v2 = vpop.f32.mrf.mxu1 }
 0x355   :  { %v584_v4 = vsub.f32 0.0, %v583_v63  ;;  %744 = vpow2.f32 %v658_v1  ;;  %v514_v37 = vadd.f32 %v513_v2, %v430_v20 }
 0x356   :  { %v717_v0 = vpop.f32.mrf.mxu1 }
 0x357   :  { %v585_v5 = vmul.f32 1.442695, %v584_v4  ;;  %v532_v48 = vmax.f32 %v514_v37, 0.0 }
 0x358   :  { %v518_v6 = vpop.f32.mrf.mxu1 }
 0x359   :  { %746 = vpow2.f32 %v585_v5  ;;  %v519_v31 = vadd.f32 %v518_v6, %v435_v22  ;;  %v560_v56 = vmul.f32 %v543_v39, %v532_v48 }
 0x35a   :  { %v720_v8 = vpop.f32.mrf.mxu1  ;;  %748 = vrsqrt.f32 %v32_v10 }
 0x35b   :  { %v533_v43 = vmax.f32 %v519_v31, 0.0 }
 0x35c   :  { %v521_v9 = vpop.f32.mrf.mxu1 }
 0x35d   :  { %v522_v38 = vadd.f32 %v521_v9, %v440_v26  ;;  %v561_v51 = vmul.f32 %v548_v46, %v533_v43 }
 0x35e   :  { %v721_v11 = vpop.f32.mrf.mxu1 }
 0x35f   :  { %v534_v49 = vmax.f32 %v522_v38, 0.0  ;;  %v564_v60 = vadd.f32 %v561_v51, %v560_v56 }
 0x360   :  { %v526_v12 = vpop.f32.mrf.mxu1 }
 0x361   :  { %v527_v44 = vadd.f32 %v526_v12, %v445_v28  ;;  %v562_v57 = vmul.f32 %v553_v55, %v534_v49 }
 0x362   :  { %v745_v13 = vpop.eup %744  ;;  %v724_v14 = vpop.f32.mrf.mxu1 }
 0x363   :  { %v602_v15 = vadd.f32 1.0, %v745_v13  ;;  %v535_v52 = vmax.f32 %v527_v44, 0.0  ;;  %v565_v1 = vadd.f32 %v564_v60, %v562_v57 }
 0x364   :  { %v529_v16 = vpop.f32.mrf.mxu1 }
 0x365   :  { %750 = vrcp.f32 %v602_v15  ;;  %v563_v62 = vmul.f32 %v558_v59, %v535_v52 }
 0x366   :  { %v747_v17 = vpop.eup %746  ;;  %v725_v18 = vpop.f32.mrf.mxu1 }
 0x367   :  { %v587_v19 = vadd.f32 1.0, %v747_v17  ;;  %v749_v21 = vpop.eup %748  ;;  %v590_v23 = vmul.f32 -0.5, %v747_v17  ;;  %v593_v29 = vand.u32 2147483647, %v747_v17  ;;  %v566_v2 = vadd.f32 %v565_v1, %v563_v62 }
 0x368   :  { %v34_v24 = vmul.f32 %v749_v21, %v32_v10 }
 0x369   :  { %752 = vlog2.f32 %v587_v19  ;;  %v591_v27 = vadd.f32 1.0, %v590_v23  ;;  %vm594_vm8 = vcmp.lt.f32.partialorder %v593_v29, 0.0004427343  ;;  %v567_v3 = vrot.slane %v566_v2, 4 }
 0x36a   :  { %v36_v32 = vsel %vm35_vm6, %v32_v10, %v34_v24  ;;  %v577_v10 = vpop.permute.xlu0 %576 }
 0x36b   :  { %v592_v36 = vmul.f32 %v747_v17, %v591_v27  ;;  %v39_v41 = vsel %vm37_vm7, %v38_v30, %v36_v32  ;;  %v568_v4 = vadd.f32 %v567_v3, %v566_v2 }
 0x36d   :  { %v569_v5 = vrot.slane %v568_v4, 2 }
 0x36f   :  { %v570_v6 = vadd.f32 %v569_v5, %v568_v4 }
 0x371   :  { %v571_v7 = vrot.slane %v570_v6, 1 }
 0x372   :  { %v751_v25 = vpop.eup %750 }
 0x373   :  { %v605_v33 = vadd.f32 0.5, %v751_v25  ;;  %v572_v8 = vadd.f32 %v571_v7, %v570_v6 }
 0x375   :  { %v606_v45 = vsub.f32 %v39_v41, %v605_v33  ;;  %v579_v11 = vadd.f32 %v577_v10, %v572_v8 }
 0x376   :  { %v753_v34 = vpop.eup %752 }
 0x377   :  { %v589_v35 = vmul.f32 0.6931472, %v753_v34  ;;  %v608_v54 = vrot.slane %v606_v45, 1 }
 0x379   :  { %v595_v42 = vsel %vm594_vm8, %v592_v36, %v589_v35 }
 0x37a   :  { %v596_v47 = vadd.f32 %v595_v42, %v580_v40 }
 0x37c   :  { %v597_v50 = vsel %vm581_vm9, %v935_v61, %v596_v47 }
 0x37d   :  { %v598_v53 = vadd.f32 1.0, %v597_v50 }
 0x37f   :  { %v610_v58 = vmul.f32 %v608_v54, %v598_v53 }
 0x381   :  { %v659_v63 = vmul.f32 -1.442695, %v610_v58 }
 0x383   :  { %754 = vpow2.f32 %v659_v63 }
 0x390   :  { %v755_v0 = vpop.eup %754 }
 0x391   :  { %v614_v61 = vadd.f32 1.0, %v755_v0 }
 0x393   :  { %756 = vrcp.f32 %v614_v61 }
 0x3a0   :  { %v757_v9 = vpop.eup %756 }
 0x3a1   :  { %v617_v12 = vsub.f32 1.0, %v757_v9  ;;  %v619_v14 = vmul.f32 %v757_v9, %v39_v41 }
 0x3a3   :  { %v618_v13 = vmul.f32 %v617_v12, %v579_v11 }
 0x3a5   :  { %v620_v15 = vadd.f32 %v619_v14, %v618_v13 }
 0x3a7   :  { %621 = vst [vmem:[#allocation2] sm:$0x1] %v620_v15 }
 0x3a8   :  { %769 = shalt.err (!%p766_p4)
}
 0x3a9   :  { %631 = dma.vmem_to_hbm [thread:$0]  %s629_s5, 16, %s949_s3, [#allocation3]  }
 0x3aa   :  { %778 = dma.done.wait [#allocation3], 16  }
 0x3ab   :  { %779 = vsyncadd [#allocation3], 4294967280 }
 0x3ac   :  { %635 = vsyncpa [#allocation3], 1 }

</bundles_post_ra>
